<compile_context>
chip_gen: v7x
topology: tpu7x:2x2x1
jax: 0.10.0
libtpu: 0.0.40
codegen_flags: <defaults>
</compile_context>

<pallas_src>
import jax
import jax.numpy as jnp
from jax.experimental import pallas as pl
from jax.experimental.pallas import tpu as pltpu

LANE = 128
SUBLANES = 8
TARGET_BLOCK_ROWS = 4096   # 4096 x 128 f32 = 2 MiB per input tile


def _round_up(x, m):
    return (x + m - 1) // m * m


def _horizon_loss_block_kernel(t_ref, o_ref, out_ref):
    """One block: BCE + 0.2 * hard-threshold BCE, reduced to an (8,128) partial."""
    t = t_ref[...].astype(jnp.float32)
    o = o_ref[...].astype(jnp.float32)

    # --- main BCE(output, target); log terms clamped at -100 like torch.nn.BCELoss ---
    log_o = jnp.maximum(jnp.log(o), -100.0)
    log_1mo = jnp.maximum(jnp.log(1.0 - o), -100.0)
    bce = -(t * log_o + (1.0 - t) * log_1mo)

    # --- sub BCE(1[o > 0.5], target): log(hard) is exactly 0 or -100, so ---
    # --- sub = 100*(1-t) when o > 0.5 else 100*t (pure VPU, no EUP work) ---
    sub = 100.0 * jnp.where(o > 0.5, 1.0 - t, t)

    contrib = bce + 0.2 * sub
    rows = contrib.shape[0]
    # VPU adds over vreg-aligned (8,128) groups; one lane-dense partial per block.
    out_ref[...] = jnp.sum(contrib.reshape(rows // SUBLANES, SUBLANES, LANE), axis=0)


@jax.jit
def horizon_base_loss(target, output):
    """JAX/Pallas equivalent of HorizonBaseLoss.forward(target, output) -> scalar."""
    assert target.shape == output.shape
    n = target.size

    # Tile sizing (all Python-static under jit).
    rows_needed = -(-n // LANE)                       # ceil(n / 128)
    rows8 = _round_up(rows_needed, SUBLANES)
    block_rows = min(TARGET_BLOCK_ROWS, rows8)        # multiple of 8
    padded_rows = _round_up(rows_needed, block_rows)
    padded_n = padded_rows * LANE
    num_blocks = padded_rows // block_rows

    # Keep native dtype for streaming (upcast happens in-kernel).  Pad with
    # (target=1, output=1), which contributes exactly 0 to both loss terms.
    t_flat = target.reshape(-1)
    o_flat = output.reshape(-1)
    if padded_n != n:
        pad = padded_n - n
        t_flat = jnp.pad(t_flat, (0, pad), constant_values=1)
        o_flat = jnp.pad(o_flat, (0, pad), constant_values=1)
    t2 = t_flat.reshape(padded_rows, LANE)
    o2 = o_flat.reshape(padded_rows, LANE)

    partials = pl.pallas_call(
        _horizon_loss_block_kernel,
        out_shape=jax.ShapeDtypeStruct((num_blocks * SUBLANES, LANE), jnp.float32),
        grid_spec=pltpu.PrefetchScalarGridSpec(
            num_scalar_prefetch=0,
            grid=(num_blocks,),
            in_specs=[
                pl.BlockSpec((block_rows, LANE), lambda i: (i, 0)),
                pl.BlockSpec((block_rows, LANE), lambda i: (i, 0)),
            ],
            out_specs=pl.BlockSpec((SUBLANES, LANE), lambda i: (i, 0)),
        ),
        compiler_params=pltpu.CompilerParams(
            dimension_semantics=("parallel",)),
    )(t2, o2)

    # mean(bce) + 0.2*mean(sub) == sum(bce + 0.2*sub) / n  (true n, not padded)
    return jnp.sum(partials) / jnp.float32(n)


def _reference(target, output):
    t = target.astype(jnp.float32)
    o = output.astype(jnp.float32)
    bce = -(t * jnp.maximum(jnp.log(o), -100.0)
            + (1.0 - t) * jnp.maximum(jnp.log(1.0 - o), -100.0))
    hard = jnp.where(o > 0.5, 1.0, 0.0)
    sub = -(t * jnp.maximum(jnp.log(hard), -100.0)
            + (1.0 - t) * jnp.maximum(jnp.log(1.0 - hard), -100.0))
    return jnp.mean(bce) + 0.2 * jnp.mean(sub)


if __name__ == "__main__":
    # HorizonBaseLoss has no parameters; only (target, output) inputs.
    key = jax.random.PRNGKey(0)
    k_t, k_o = jax.random.split(key)
    B, C, H, W = 2, 4, 16, 16  # 2048 elements

    target = jax.random.uniform(k_t, (B, C, H, W), dtype=jnp.float32)            # in [0, 1)
    output = jax.nn.sigmoid(jax.random.normal(k_o, (B, C, H, W), jnp.float32))   # in (0, 1)

    loss = horizon_base_loss(target, output)
    loss = jax.block_until_ready(loss)

    ref = _reference(target, output)
    assert jnp.allclose(loss, ref, rtol=1e-5, atol=1e-5), (loss, ref)

    # Also exercise a non-tile-aligned shape to validate the padding path.
    t_odd = jax.random.uniform(k_t, (3, 5, 7, 11), dtype=jnp.float32)
    o_odd = jax.nn.sigmoid(jax.random.normal(k_o, (3, 5, 7, 11), jnp.float32))
    loss_odd = jax.block_until_ready(horizon_base_loss(t_odd, o_odd))
    ref_odd = _reference(t_odd, o_odd)
    assert jnp.allclose(loss_odd, ref_odd, rtol=1e-5, atol=1e-5), (loss_odd, ref_odd)

    print("KERNEL_OK")
</pallas_src>

<mosaic_0001>
module attributes {stable_mosaic.version = 11 : i64} {
  func.func @_horizon_loss_block_kernel(%arg0: i32, %arg1: memref<16x128xf32, #tpu.memory_space<vmem>>, %arg2: memref<16x128xf32, #tpu.memory_space<vmem>>, %arg3: memref<8x128xf32, #tpu.memory_space<vmem>>) attributes {dimension_semantics = [#tpu.dimension_semantics<parallel>], iteration_bounds = array<i64: 1>, scalar_prefetch = 0 : i64, scratch_operands = 0 : i64, tpu.core_type = #tpu.core_type<tc>, window_params = [{transform_indices = @transform_0, window_bounds = array<i64: 16, 128>}, {transform_indices = @transform_1, window_bounds = array<i64: 16, 128>}, {transform_indices = @transform_2, window_bounds = array<i64: 8, 128>}]} {
    %c0 = arith.constant 0 : index
    %c0_0 = arith.constant 0 : index
    %0 = vector.load %arg1[%c0, %c0_0] : memref<16x128xf32, #tpu.memory_space<vmem>>, vector<16x128xf32>
    %c0_1 = arith.constant 0 : index
    %c0_2 = arith.constant 0 : index
    %1 = vector.load %arg2[%c0_1, %c0_2] : memref<16x128xf32, #tpu.memory_space<vmem>>, vector<16x128xf32>
    %2 = math.log %1 : vector<16x128xf32>
    %cst = arith.constant -1.000000e+02 : f32
    %3 = vector.broadcast %cst : f32 to vector<16x128xf32>
    %4 = arith.maximumf %2, %3 : vector<16x128xf32>
    %cst_3 = arith.constant 1.000000e+00 : f32
    %5 = vector.broadcast %cst_3 : f32 to vector<16x128xf32>
    %6 = arith.subf %5, %1 : vector<16x128xf32>
    %7 = math.log %6 : vector<16x128xf32>
    %cst_4 = arith.constant -1.000000e+02 : f32
    %8 = vector.broadcast %cst_4 : f32 to vector<16x128xf32>
    %9 = arith.maximumf %7, %8 : vector<16x128xf32>
    %10 = arith.mulf %0, %4 : vector<16x128xf32>
    %cst_5 = arith.constant 1.000000e+00 : f32
    %11 = vector.broadcast %cst_5 : f32 to vector<16x128xf32>
    %12 = arith.subf %11, %0 : vector<16x128xf32>
    %13 = arith.mulf %12, %9 : vector<16x128xf32>
    %14 = arith.addf %10, %13 : vector<16x128xf32>
    %cst_6 = arith.constant 0.000000e+00 : f32
    %15 = vector.broadcast %cst_6 : f32 to vector<16x128xf32>
    %16 = arith.subf %15, %14 : vector<16x128xf32>
    %cst_7 = arith.constant 5.000000e-01 : f32
    %17 = vector.broadcast %cst_7 : f32 to vector<16x128xf32>
    %18 = arith.cmpf ogt, %1, %17 : vector<16x128xf32>
    %cst_8 = arith.constant 1.000000e+00 : f32
    %19 = vector.broadcast %cst_8 : f32 to vector<16x128xf32>
    %20 = arith.subf %19, %0 : vector<16x128xf32>
    %21 = arith.select %18, %20, %0 : vector<16x128xi1>, vector<16x128xf32>
    %cst_9 = arith.constant 1.000000e+02 : f32
    %22 = vector.broadcast %cst_9 : f32 to vector<16x128xf32>
    %23 = arith.mulf %22, %21 : vector<16x128xf32>
    %cst_10 = arith.constant 2.000000e-01 : f32
    %24 = vector.broadcast %cst_10 : f32 to vector<16x128xf32>
    %25 = arith.mulf %24, %23 : vector<16x128xf32>
    %26 = arith.addf %16, %25 : vector<16x128xf32>
    %27 = vector.shape_cast %26 : vector<16x128xf32> to vector<2x8x128xf32>
    %cst_11 = arith.constant dense<0.000000e+00> : vector<8x128xf32>
    %28 = vector.multi_reduction <add>, %27, %cst_11 [0] : vector<2x8x128xf32> to vector<8x128xf32>
    %c0_12 = arith.constant 0 : index
    %c0_13 = arith.constant 0 : index
    %29 = vector.load %arg3[%c0_12, %c0_13] : memref<8x128xf32, #tpu.memory_space<vmem>>, vector<8x128xf32>
    tpu.vector_store %arg3[%c0_12, %c0_13], %28 {strides = array<i32>} : memref<8x128xf32, #tpu.memory_space<vmem>>, vector<8x128xf32>,
    return
  }
  func.func @transform_0(%arg0: i32) -> (i32, i32) {
    %c0_i32 = arith.constant 0 : i32
    %c0_i32_0 = arith.constant 0 : i32
    return %arg0, %c0_i32 : i32, i32
  }
  func.func @transform_1(%arg0: i32) -> (i32, i32) {
    %c0_i32 = arith.constant 0 : i32
    %c0_i32_0 = arith.constant 0 : i32
    return %arg0, %c0_i32 : i32, i32
  }
  func.func @transform_2(%arg0: i32) -> (i32, i32) {
    %c0_i32 = arith.constant 0 : i32
    %c0_i32_0 = arith.constant 0 : i32
    return %arg0, %c0_i32 : i32, i32
  }
}

</mosaic_0001>

<bundles_post_ra>
// kernel: horizon_base_loss.1
= control target key start
LH: loop header
LB: loop body
LE: loop exit
PB: predicated region body
PF: predicated region fallthrough
CT: control target
= control target key end

     0   :  { %s93_s1 = inlined_call_operand.vmem [shape: f32[16,128], index: 1, kind: input, shape index: {}]   ;;  %s94_s0 = inlined_call_operand.vmem [shape: f32[16,128], index: 0, kind: input, shape index: {}]   ;;  %s95_s2 = inlined_call_operand.vmem [shape: f32[8,128], index: 2, kind: output, shape index: {}]  }
   0x1   :  { %v13_v0 = vld [vmem:[%s93_s1] sm:$0xff]  ;;  %v14_v1 = vld [vmem:[%s93_s1 + $0x8] sm:$0xff] }
   0x2   :  { %55 = vlog2.f32 %v13_v0  ;;  %v21_v2 = vsub.f32 1.0, %v13_v0  ;;  %v22_v3 = vsub.f32 1.0, %v14_v1  ;;  %v11_v4 = vld [vmem:[%s94_s0] sm:$0xff]  ;;  %v12_v5 = vld [vmem:[%s94_s0 + $0x8] sm:$0xff]  ;;  %vm39_vm0 = vcmp.gt.f32.partialorder %v13_v0, 0.5 }
   0x3   :  { %57 = vlog2.f32 %v14_v1  ;;  %v31_v6 = vsub.f32 1.0, %v11_v4  ;;  %v32_v7 = vsub.f32 1.0, %v12_v5  ;;  %vm40_vm1 = vcmp.gt.f32.partialorder %v14_v1, 0.5 }
   0x4   :  { %59 = vlog2.f32 %v21_v2 }
   0x5   :  { %61 = vlog2.f32 %v22_v3  ;;  %v41_v13 = vsel %vm39_vm0, %v31_v6, %v11_v4  ;;  %v42_v17 = vsel %vm40_vm1, %v32_v7, %v12_v5 }
   0x6   :  { %v43_v22 = vmul.f32 100.0, %v41_v13  ;;  %v44_v25 = vmul.f32 100.0, %v42_v17 }
   0x8   :  { %v45_v29 = vmul.f32 0.2, %v43_v22  ;;  %v46_v31 = vmul.f32 0.2, %v44_v25 }
   0xc   :  { %v56_v8 = vpop.eup %55 }
   0xd   :  { %v58_v9 = vpop.eup %57  ;;  %v16_v10 = vmul.f32 0.6931472, %v56_v8 }
   0xe   :  { %v60_v11 = vpop.eup %59  ;;  %v18_v12 = vmul.f32 0.6931472, %v58_v9 }
   0xf   :  { %v62_v14 = vpop.eup %61  ;;  %v19_v15 = vmax.f32 %v16_v10, -100.0  ;;  %v24_v16 = vmul.f32 0.6931472, %v60_v11 }
  0x10   :  { %v20_v18 = vmax.f32 %v18_v12, -100.0  ;;  %v26_v19 = vmul.f32 0.6931472, %v62_v14 }
  0x11   :  { %v27_v20 = vmax.f32 %v24_v16, -100.0  ;;  %v29_v21 = vmul.f32 %v19_v15, %v11_v4 }
  0x12   :  { %v28_v23 = vmax.f32 %v26_v19, -100.0  ;;  %v30_v24 = vmul.f32 %v20_v18, %v12_v5 }
  0x13   :  { %v33_v26 = vmul.f32 %v31_v6, %v27_v20 }
  0x14   :  { %v34_v27 = vmul.f32 %v32_v7, %v28_v23 }
  0x15   :  { %v35_v28 = vadd.f32 %v33_v26, %v29_v21 }
  0x16   :  { %v36_v30 = vadd.f32 %v34_v27, %v30_v24 }
  0x17   :  { %v37_v32 = vsub.f32 0.0, %v35_v28 }
  0x18   :  { %v38_v33 = vsub.f32 0.0, %v36_v30 }
  0x19   :  { %v47_v34 = vadd.f32 %v45_v29, %v37_v32 }
  0x1a   :  { %v48_v35 = vadd.f32 %v46_v31, %v38_v33 }
  0x1c   :  { %v49_v36 = vadd.f32 %v48_v35, %v47_v34 }
  0x1e   :  { %50 = vst [vmem:[%s95_s2] sm:$0xff] %v49_v36 }

</bundles_post_ra>
